<compile_context>
chip_gen: v5e
topology: v5e:2x2
jax: 0.10.0
libtpu: 0.0.40
codegen_flags: <defaults>
</compile_context>

<pallas_src>
import functools

import numpy as np
import jax
import jax.numpy as jnp
from jax.experimental import pallas as pl
from jax.experimental.pallas import tpu as pltpu

PP_SIZE = (1, 2, 4, 8)                       # pp_layer=4 -> pools of size 2**i
FEATS_SIZE = sum(s * s for s in PP_SIZE)     # 85 == (4**pp_layer - 1) // 3
DESCRIPTOR = 8
MID_FEATS = 16

_VMEM = pl.BlockSpec(memory_space=pltpu.MemorySpace.VMEM)


def _build_pool_matrix(H, W, pp_size):
    """(H*W, sum(s^2)) matrix M such that x_flat @ M == concat of adaptive avg pools."""
    # TODO(synk): PyTorch AdaptiveAvgPool2d handles non-divisible H, W with uneven
    # bins; this even-bin construction requires H % s == 0 and W % s == 0.
    cols = []
    for s in pp_size:
        assert H % s == 0 and W % s == 0, "pyramid size must divide H and W"
        bh, bw = H // s, W // s
        m = np.zeros((H * W, s * s), np.float32)
        for i in range(s):
            for j in range(s):
                for hh in range(i * bh, (i + 1) * bh):
                    for ww in range(j * bw, (j + 1) * bw):
                        m[hh * W + ww, i * s + j] = 1.0 / (bh * bw)
        cols.append(m)
    return np.concatenate(cols, axis=1)


def _slab_offsets(B, C, HW):
    """Row offsets of the packed parameter slab (all 8-aligned)."""
    D, M = DESCRIPTOR, MID_FEATS
    R = 2 * B * C                               # total per-channel rows (both branches)
    off_w1 = HW                                 # zero-padded block-diag Linear1 (2*C*2D rows)
    off_b1 = off_w1 + 2 * C * 2 * D             # folded des-conv bias (1 row used, 8 reserved)
    off_w2 = off_b1 + 8                         # per-row Linear2 weights (R rows)
    off_b2 = off_w2 + R                         # per-row Linear2 bias column (R rows, col 0)
    off_p = off_b2 + R                          # batch-broadcast selector P (R rows, cols 0:B)
    total = off_p + R
    return off_w1, off_b1, off_w2, off_b2, off_p, total


# --------------------------- the single fused kernel -------------------------
def _fuse_kernel(rows_ref, slab_ref, out_ref, *, B, C, HW):
    """Everything resident in VMEM, no grid.

    rows_ref : (2*B*C, HW)  per-channel rows; x-branch rows first, then y-branch.
               Row order inside a branch is (c, b)  ->  r = c*B + b.
    slab_ref : (TOTAL, 2*M) packed parameters (see _slab_offsets / make_params).
    out_ref  : (3*B*C, HW)  [rf_x + rf_y ; rf_x ; rf_y] stacked along rows.
    """
    D, M = DESCRIPTOR, MID_FEATS
    CB = C * B
    R = 2 * CB
    off_w1, off_b1, off_w2, off_b2, off_p, _ = _slab_offsets(B, C, HW)

    rows = rows_ref[...]                                                 # (R, HW)

    # ---- pooling pyramid + 1x1 descriptor conv, pre-folded host-side into m ----
    m_mat = slab_ref[0:HW, 0:2 * D]                                      # (HW, 2D) = [m_x | m_y]
    z_all = jnp.dot(rows, m_mat, preferred_element_type=jnp.float32)     # (R, 2D)

    # ---- Linear1 for both branches, merged: zero-padded block-diagonal weight
    # consumed as 2C independent (B,2D)@(2D,2M) accumulating MXU pushes.
    # (x rows only hit the x-half columns, y rows the y-half; wrong-branch
    #  descriptor lanes multiply zero weight rows.)
    acc = jnp.zeros((B, 2 * M), jnp.float32)
    for q in range(2 * C):                                               # static unroll, tiny
        piece = z_all[q * B:(q + 1) * B, :]                              # (B, 2D)
        wq = slab_ref[off_w1 + q * 2 * D: off_w1 + (q + 1) * 2 * D, 0:2 * M]   # (2D, 2M)
        acc = acc + jnp.dot(piece, wq, preferred_element_type=jnp.float32)
    b1 = slab_ref[off_b1:off_b1 + 1, 0:2 * M]                            # (1, 2M) folded des bias
    h = jnp.maximum(acc + b1, 0.0)                                       # (B, 2M) = [h_x | h_y]

    # ---- Linear2 + sigmoid, expressed per-row so the gate lands directly as an
    # (R, 1) column matching the row order (no reshape / transpose needed).
    p_sel = slab_ref[off_p:off_p + R, 0:B]                               # (R, B): P[r,b]=1 iff b==r%B
    hfull = jnp.dot(p_sel, h, preferred_element_type=jnp.float32)        # (R, 2M): h[r % B]
    w2e = slab_ref[off_w2:off_w2 + R, 0:2 * M]                           # (R, 2M) per-row W2 rows
    b2c = slab_ref[off_b2:off_b2 + R, 0:1]                               # (R, 1)
    gate = jax.nn.sigmoid(jnp.sum(hfull * w2e, axis=1, keepdims=True) + b2c)   # (R, 1)

    # ---- apply channel gates (lane-broadcast) + 'add' merge, all lane-dense ----
    gated = rows * gate                                                  # (R, HW)
    rfx = gated[0:CB, :]
    rfy = gated[CB:R, :]
    out_ref[0:CB, :] = rfx + rfy                                         # General_Fuse_Block 'add'
    out_ref[CB:2 * CB, :] = rfx                                          # module also returns rf_x
    out_ref[2 * CB:3 * CB, :] = rfy                                      # and rf_y


def fuse_module_forward(x, y, params):
    B, C, H, W = x.shape
    HW = H * W
    CB = C * B
    assert HW % 128 == 0 and CB % 8 == 0, "toy config alignment (pad for general shapes)"

    # channel-major per-channel rows (layout plumbing only, done outside the kernel)
    x_rows = jnp.transpose(x, (1, 0, 2, 3)).reshape(CB, HW)
    y_rows = jnp.transpose(y, (1, 0, 2, 3)).reshape(CB, HW)
    rows = jnp.concatenate([x_rows, y_rows], axis=0)                     # (2CB, HW) one activation DMA

    kernel = functools.partial(_fuse_kernel, B=B, C=C, HW=HW)
    out_rows = pl.pallas_call(
        kernel,
        out_shape=jax.ShapeDtypeStruct((3 * CB, HW), jnp.float32),       # one coalesced output DMA
        in_specs=[_VMEM, _VMEM],                                         # rows + parameter slab
        out_specs=_VMEM,
    )(rows, params["slab"])

    def unrows(r):
        return jnp.transpose(r.reshape(C, B, H, W), (1, 0, 2, 3))

    return (unrows(out_rows[0:CB]),
            unrows(out_rows[CB:2 * CB]),
            unrows(out_rows[2 * CB:3 * CB]))


# --------------------------- parameters --------------------------------------
def make_params(key, B, C, H, W):
    HW = H * W
    D, M = DESCRIPTOR, MID_FEATS
    CB = C * B
    R = 2 * CB
    assert HW % 128 == 0 and CB % 8 == 0
    poolmat = _build_pool_matrix(H, W, PP_SIZE)                          # (HW, 85)

    def make_branch(k):
        ks = jax.random.split(k, 5)
        return dict(
            wdes=0.1 * jax.random.normal(ks[0], (D, FEATS_SIZE), jnp.float32),  # Conv2d(85, D, 1)
            bdes=0.1 * jax.random.normal(ks[1], (D,), jnp.float32),
            w1=0.1 * jax.random.normal(ks[2], (M, C * D), jnp.float32),         # Linear(C*D, M, bias=False)
            w2=0.1 * jax.random.normal(ks[3], (C, M), jnp.float32),             # Linear(M, C)
            b2=0.1 * jax.random.normal(ks[4], (C,), jnp.float32),
        )

    kx, ky = jax.random.split(key)
    branches = [make_branch(kx), make_branch(ky)]

    off_w1, off_b1, off_w2, off_b2, off_p, total = _slab_offsets(B, C, HW)
    slab = np.zeros((total, 2 * M), np.float32)

    for i, br in enumerate(branches):                                    # i=0: x-branch, i=1: y-branch
        wdes = np.asarray(br["wdes"], np.float32)
        bdes = np.asarray(br["bdes"], np.float32)
        w1t = np.asarray(br["w1"], np.float32).T                         # (C*D, M)
        w2 = np.asarray(br["w2"], np.float32)                            # (C, M)
        b2 = np.asarray(br["b2"], np.float32)                            # (C,)

        # pooling pyramid + 1x1 descriptor conv folded: (HW, D) per branch, side by side
        m_small = poolmat @ wdes.T
        slab[0:HW, i * D:(i + 1) * D] = m_small

        # zero-padded block-diagonal Linear1: row block q*2D..(q+1)*2D multiplies
        # z_all rows of piece q; only the own-branch descriptor lanes get weights.
        for c in range(C):
            rbase = off_w1 + i * (C * 2 * D) + c * 2 * D + i * D
            slab[rbase:rbase + D, i * M:(i + 1) * M] = w1t[c * D:(c + 1) * D, :]

        # descriptor-conv bias folded through the bias-free first Linear
        slab[off_b1, i * M:(i + 1) * M] = np.tile(bdes, C) @ w1t

        # Linear2 expanded to per-row weights / bias (row order: branch, c, b)
        for c in range(C):
            for bb in range(B):
                r = i * CB + c * B + bb
                slab[off_w2 + r, i * M:(i + 1) * M] = w2[c, :]
                slab[off_b2 + r, 0] = b2[c]

    # batch-broadcast selector: P[r, b] = 1 iff b == r % B  (hfull = P @ h)
    for r in range(R):
        slab[off_p + r, r % B] = 1.0

    return {"slab": jnp.asarray(slab),                                   # (440, 32) single weight DMA
            "ref_x": branches[0], "ref_y": branches[1]}


# --------------------------- pure-JAX reference ------------------------------
def _adaptive_pyramid(x):
    B, C, H, W = x.shape
    feats = []
    for s in PP_SIZE:
        pooled = x.reshape(B, C, s, H // s, s, W // s).mean(axis=(3, 5))
        feats.append(pooled.reshape(B, C, s * s))
    return jnp.concatenate(feats, axis=-1)                               # (B, C, 85)


def _pdl_gate_ref(x, br):
    B, C = x.shape[:2]
    z = _adaptive_pyramid(x)
    zd = jnp.einsum("bcf,df->bcd", z, br["wdes"]) + br["bdes"]           # 1x1 descriptor conv
    zflat = zd.reshape(B, C * DESCRIPTOR)
    h = jnp.maximum(zflat @ br["w1"].T, 0.0)
    return jax.nn.sigmoid(h @ br["w2"].T + br["b2"])                     # (B, C)


def fuse_module_reference(x, y, p):
    gx = _pdl_gate_ref(x, p["ref_x"])
    gy = _pdl_gate_ref(y, p["ref_y"])
    rfx = x * gx[:, :, None, None]
    rfy = y * gy[:, :, None, None]
    return rfx + rfy, rfx, rfy


if __name__ == "__main__":
    B, C, H, W = 2, 4, 16, 16
    key = jax.random.PRNGKey(0)
    kx, ky, kp = jax.random.split(key, 3)
    x = jax.random.normal(kx, (B, C, H, W), jnp.float32)
    y = jax.random.normal(ky, (B, C, H, W), jnp.float32)
    params = make_params(kp, B, C, H, W)

    out, rf_x, rf_y = fuse_module_forward(x, y, params)
    jax.block_until_ready((out, rf_x, rf_y))

    ref_out, ref_rfx, ref_rfy = fuse_module_reference(x, y, params)
    np.testing.assert_allclose(np.asarray(out), np.asarray(ref_out), rtol=5e-4, atol=1e-5)
    np.testing.assert_allclose(np.asarray(rf_x), np.asarray(ref_rfx), rtol=5e-4, atol=1e-5)
    np.testing.assert_allclose(np.asarray(rf_y), np.asarray(ref_rfy), rtol=5e-4, atol=1e-5)

    print("KERNEL_OK")
</pallas_src>

<mosaic_0001>
module attributes {stable_mosaic.version = 11 : i64} {
  func.func @_fuse_kernel(%arg0: memref<16x256xf32, #tpu.memory_space<vmem>>, %arg1: memref<440x32xf32, #tpu.memory_space<vmem>>, %arg2: memref<24x256xf32, #tpu.memory_space<vmem>>) attributes {dimension_semantics = [], scalar_prefetch = 0 : i64, scratch_operands = 0 : i64, tpu.core_type = #tpu.core_type<tc>} {
    %c0 = arith.constant 0 : index
    %c0_0 = arith.constant 0 : index
    %0 = vector.load %arg0[%c0, %c0_0] : memref<16x256xf32, #tpu.memory_space<vmem>>, vector<16x256xf32>
    %c0_1 = arith.constant 0 : index
    %c0_2 = arith.constant 0 : index
    %1 = vector.load %arg1[%c0_1, %c0_2] : memref<440x32xf32, #tpu.memory_space<vmem>>, vector<256x16xf32>
    %cst = arith.constant dense<0.000000e+00> : vector<16x16xf32>
    %2 = tpu.matmul %0, %1, %cst {dimension_numbers = #tpu.dot_dimension_numbers<[1], [0], [0], [1], [0, 0, 1, 1], [], []>} : vector<16x256xf32>, vector<256x16xf32>, vector<16x16xf32> -> vector<16x16xf32>
    %cst_3 = arith.constant 0.000000e+00 : f32
    %3 = vector.broadcast %cst_3 : f32 to vector<2x32xf32>
    %4 = vector.extract_strided_slice %2 {offsets = [0, 0], sizes = [2, 16], strides = [1, 1]} : vector<16x16xf32> to vector<2x16xf32>
    %c256 = arith.constant 256 : index
    %c0_4 = arith.constant 0 : index
    %5 = vector.load %arg1[%c256, %c0_4] : memref<440x32xf32, #tpu.memory_space<vmem>>, vector<16x32xf32>
    %cst_5 = arith.constant dense<0.000000e+00> : vector<2x32xf32>
    %6 = tpu.matmul %4, %5, %cst_5 {dimension_numbers = #tpu.dot_dimension_numbers<[1], [0], [0], [1], [0, 0, 1, 1], [], []>} : vector<2x16xf32>, vector<16x32xf32>, vector<2x32xf32> -> vector<2x32xf32>
    %7 = arith.addf %3, %6 : vector<2x32xf32>
    %8 = vector.extract_strided_slice %2 {offsets = [2, 0], sizes = [2, 16], strides = [1, 1]} : vector<16x16xf32> to vector<2x16xf32>
    %c272 = arith.constant 272 : index
    %c0_6 = arith.constant 0 : index
    %9 = vector.load %arg1[%c272, %c0_6] : memref<440x32xf32, #tpu.memory_space<vmem>>, vector<16x32xf32>
    %cst_7 = arith.constant dense<0.000000e+00> : vector<2x32xf32>
    %10 = tpu.matmul %8, %9, %cst_7 {dimension_numbers = #tpu.dot_dimension_numbers<[1], [0], [0], [1], [0, 0, 1, 1], [], []>} : vector<2x16xf32>, vector<16x32xf32>, vector<2x32xf32> -> vector<2x32xf32>
    %11 = arith.addf %7, %10 : vector<2x32xf32>
    %12 = vector.extract_strided_slice %2 {offsets = [4, 0], sizes = [2, 16], strides = [1, 1]} : vector<16x16xf32> to vector<2x16xf32>
    %c288 = arith.constant 288 : index
    %c0_8 = arith.constant 0 : index
    %13 = vector.load %arg1[%c288, %c0_8] : memref<440x32xf32, #tpu.memory_space<vmem>>, vector<16x32xf32>
    %cst_9 = arith.constant dense<0.000000e+00> : vector<2x32xf32>
    %14 = tpu.matmul %12, %13, %cst_9 {dimension_numbers = #tpu.dot_dimension_numbers<[1], [0], [0], [1], [0, 0, 1, 1], [], []>} : vector<2x16xf32>, vector<16x32xf32>, vector<2x32xf32> -> vector<2x32xf32>
    %15 = arith.addf %11, %14 : vector<2x32xf32>
    %16 = vector.extract_strided_slice %2 {offsets = [6, 0], sizes = [2, 16], strides = [1, 1]} : vector<16x16xf32> to vector<2x16xf32>
    %c304 = arith.constant 304 : index
    %c0_10 = arith.constant 0 : index
    %17 = vector.load %arg1[%c304, %c0_10] : memref<440x32xf32, #tpu.memory_space<vmem>>, vector<16x32xf32>
    %cst_11 = arith.constant dense<0.000000e+00> : vector<2x32xf32>
    %18 = tpu.matmul %16, %17, %cst_11 {dimension_numbers = #tpu.dot_dimension_numbers<[1], [0], [0], [1], [0, 0, 1, 1], [], []>} : vector<2x16xf32>, vector<16x32xf32>, vector<2x32xf32> -> vector<2x32xf32>
    %19 = arith.addf %15, %18 : vector<2x32xf32>
    %20 = vector.extract_strided_slice %2 {offsets = [8, 0], sizes = [2, 16], strides = [1, 1]} : vector<16x16xf32> to vector<2x16xf32>
    %c320 = arith.constant 320 : index
    %c0_12 = arith.constant 0 : index
    %21 = vector.load %arg1[%c320, %c0_12] : memref<440x32xf32, #tpu.memory_space<vmem>>, vector<16x32xf32>
    %cst_13 = arith.constant dense<0.000000e+00> : vector<2x32xf32>
    %22 = tpu.matmul %20, %21, %cst_13 {dimension_numbers = #tpu.dot_dimension_numbers<[1], [0], [0], [1], [0, 0, 1, 1], [], []>} : vector<2x16xf32>, vector<16x32xf32>, vector<2x32xf32> -> vector<2x32xf32>
    %23 = arith.addf %19, %22 : vector<2x32xf32>
    %24 = vector.extract_strided_slice %2 {offsets = [10, 0], sizes = [2, 16], strides = [1, 1]} : vector<16x16xf32> to vector<2x16xf32>
    %c336 = arith.constant 336 : index
    %c0_14 = arith.constant 0 : index
    %25 = vector.load %arg1[%c336, %c0_14] : memref<440x32xf32, #tpu.memory_space<vmem>>, vector<16x32xf32>
    %cst_15 = arith.constant dense<0.000000e+00> : vector<2x32xf32>
    %26 = tpu.matmul %24, %25, %cst_15 {dimension_numbers = #tpu.dot_dimension_numbers<[1], [0], [0], [1], [0, 0, 1, 1], [], []>} : vector<2x16xf32>, vector<16x32xf32>, vector<2x32xf32> -> vector<2x32xf32>
    %27 = arith.addf %23, %26 : vector<2x32xf32>
    %28 = vector.extract_strided_slice %2 {offsets = [12, 0], sizes = [2, 16], strides = [1, 1]} : vector<16x16xf32> to vector<2x16xf32>
    %c352 = arith.constant 352 : index
    %c0_16 = arith.constant 0 : index
    %29 = vector.load %arg1[%c352, %c0_16] : memref<440x32xf32, #tpu.memory_space<vmem>>, vector<16x32xf32>
    %cst_17 = arith.constant dense<0.000000e+00> : vector<2x32xf32>
    %30 = tpu.matmul %28, %29, %cst_17 {dimension_numbers = #tpu.dot_dimension_numbers<[1], [0], [0], [1], [0, 0, 1, 1], [], []>} : vector<2x16xf32>, vector<16x32xf32>, vector<2x32xf32> -> vector<2x32xf32>
    %31 = arith.addf %27, %30 : vector<2x32xf32>
    %32 = vector.extract_strided_slice %2 {offsets = [14, 0], sizes = [2, 16], strides = [1, 1]} : vector<16x16xf32> to vector<2x16xf32>
    %c368 = arith.constant 368 : index
    %c0_18 = arith.constant 0 : index
    %33 = vector.load %arg1[%c368, %c0_18] : memref<440x32xf32, #tpu.memory_space<vmem>>, vector<16x32xf32>
    %cst_19 = arith.constant dense<0.000000e+00> : vector<2x32xf32>
    %34 = tpu.matmul %32, %33, %cst_19 {dimension_numbers = #tpu.dot_dimension_numbers<[1], [0], [0], [1], [0, 0, 1, 1], [], []>} : vector<2x16xf32>, vector<16x32xf32>, vector<2x32xf32> -> vector<2x32xf32>
    %35 = arith.addf %31, %34 : vector<2x32xf32>
    %c384 = arith.constant 384 : index
    %c0_20 = arith.constant 0 : index
    %36 = vector.load %arg1[%c384, %c0_20] : memref<440x32xf32, #tpu.memory_space<vmem>>, vector<1x32xf32>
    %37 = vector.broadcast %36 : vector<1x32xf32> to vector<2x32xf32>
    %38 = arith.addf %35, %37 : vector<2x32xf32>
    %cst_21 = arith.constant 0.000000e+00 : f32
    %39 = vector.broadcast %cst_21 : f32 to vector<2x32xf32>
    %40 = arith.maximumf %38, %39 : vector<2x32xf32>
    %c424 = arith.constant 424 : index
    %c0_22 = arith.constant 0 : index
    %41 = vector.load %arg1[%c424, %c0_22] : memref<440x32xf32, #tpu.memory_space<vmem>>, vector<16x2xf32>
    %cst_23 = arith.constant dense<0.000000e+00> : vector<16x32xf32>
    %42 = tpu.matmul %41, %40, %cst_23 {dimension_numbers = #tpu.dot_dimension_numbers<[1], [0], [0], [1], [0, 0, 1, 1], [], []>} : vector<16x2xf32>, vector<2x32xf32>, vector<16x32xf32> -> vector<16x32xf32>
    %c392 = arith.constant 392 : index
    %c0_24 = arith.constant 0 : index
    %43 = vector.load %arg1[%c392, %c0_24] : memref<440x32xf32, #tpu.memory_space<vmem>>, vector<16x32xf32>
    %c408 = arith.constant 408 : index
    %c0_25 = arith.constant 0 : index
    %44 = vector.load %arg1[%c408, %c0_25] : memref<440x32xf32, #tpu.memory_space<vmem>>, vector<16x1xf32>
    %45 = arith.mulf %42, %43 : vector<16x32xf32>
    %cst_26 = arith.constant dense<0.000000e+00> : vector<16xf32>
    %46 = vector.multi_reduction <add>, %45, %cst_26 [1] : vector<16x32xf32> to vector<16xf32>
    %47 = vector.shape_cast %46 : vector<16xf32> to vector<16x1xf32>
    %48 = arith.addf %47, %44 : vector<16x1xf32>
    %49 = arith.negf %48 : vector<16x1xf32>
    %50 = math.exp %49 : vector<16x1xf32>
    %cst_27 = arith.constant 1.000000e+00 : f32
    %51 = vector.broadcast %cst_27 : f32 to vector<16x1xf32>
    %52 = arith.addf %51, %50 : vector<16x1xf32>
    %53 = arith.divf %51, %52 : vector<16x1xf32>
    %54 = vector.broadcast %53 : vector<16x1xf32> to vector<16x256xf32>
    %55 = arith.mulf %0, %54 : vector<16x256xf32>
    %56 = vector.extract_strided_slice %55 {offsets = [0, 0], sizes = [8, 256], strides = [1, 1]} : vector<16x256xf32> to vector<8x256xf32>
    %57 = vector.extract_strided_slice %55 {offsets = [8, 0], sizes = [8, 256], strides = [1, 1]} : vector<16x256xf32> to vector<8x256xf32>
    %58 = arith.addf %56, %57 : vector<8x256xf32>
    %c0_28 = arith.constant 0 : index
    %c0_29 = arith.constant 0 : index
    %59 = vector.load %arg2[%c0_28, %c0_29] : memref<24x256xf32, #tpu.memory_space<vmem>>, vector<8x256xf32>
    tpu.vector_store %arg2[%c0_28, %c0_29], %58 {strides = array<i32>} : memref<24x256xf32, #tpu.memory_space<vmem>>, vector<8x256xf32>,
    %c8 = arith.constant 8 : index
    %c0_30 = arith.constant 0 : index
    %60 = vector.load %arg2[%c8, %c0_30] : memref<24x256xf32, #tpu.memory_space<vmem>>, vector<8x256xf32>
    tpu.vector_store %arg2[%c8, %c0_30], %56 {strides = array<i32>} : memref<24x256xf32, #tpu.memory_space<vmem>>, vector<8x256xf32>,
    %c16 = arith.constant 16 : index
    %c0_31 = arith.constant 0 : index
    %61 = vector.load %arg2[%c16, %c0_31] : memref<24x256xf32, #tpu.memory_space<vmem>>, vector<8x256xf32>
    tpu.vector_store %arg2[%c16, %c0_31], %57 {strides = array<i32>} : memref<24x256xf32, #tpu.memory_space<vmem>>, vector<8x256xf32>,
    return
  }
}

</mosaic_0001>

<bundles_post_ra>
// kernel: tpu_custom_call.1
= control target key start
LH: loop header
LB: loop body
LE: loop exit
PB: predicated region body
PF: predicated region fallthrough
CT: control target
= control target key end

     0   :  { %s711_s0 = inlined_call_operand.vmem [shape: f32[16,256], index: 0, kind: input, shape index: {}]   ;;  %s712_s1 = inlined_call_operand.vmem [shape: f32[440,32], index: 1, kind: input, shape index: {}]   ;;  %s713_s2 = inlined_call_operand.hbm [shape: f32[24,256], index: 2, kind: output, shape index: {}]  }
   0x1   :  { %v31_v0 = vld [vmem:[%s712_s1 + $0x78] sm:$0xff]  ;;  %v30_v2 = vld [vmem:[%s712_s1 + $0x70] sm:$0xff]  ;;  %v29_v4 = vld [vmem:[%s712_s1 + $0x68] sm:$0xff] }
   0x2   :  { %v47_v1 = vld [vmem:[%s712_s1 + $0xf8] sm:$0xff]  ;;  %48 = vmatpush.msra.mxu0 %v31_v0  ;;  %v46_v3 = vld [vmem:[%s712_s1 + $0xf0] sm:$0xff]  ;;  %v45_v5 = vld [vmem:[%s712_s1 + $0xe8] sm:$0xff] }
   0x3   :  { %71 = vmatpush.msra.mxu1 %v47_v1  ;;  %v28_v6 = vld [vmem:[%s712_s1 + $0x60] sm:$0xff]  ;;  %v27_v8 = vld [vmem:[%s712_s1 + $0x58] sm:$0xff]  ;;  %v26_v10 = vld [vmem:[%s712_s1 + $0x50] sm:$0xff] }
   0x4   :  { %49 = vmatpush.msra.mxu0 %v30_v2  ;;  %v44_v7 = vld [vmem:[%s712_s1 + $0xe0] sm:$0xff]  ;;  %v43_v9 = vld [vmem:[%s712_s1 + $0xd8] sm:$0xff]  ;;  %v42_v11 = vld [vmem:[%s712_s1 + $0xd0] sm:$0xff] }
   0x5   :  { %72 = vmatpush.msra.mxu1 %v46_v3  ;;  %v25_v12 = vld [vmem:[%s712_s1 + $0x48] sm:$0xff]  ;;  %v24_v14 = vld [vmem:[%s712_s1 + $0x40] sm:$0xff] }
   0x6   :  { %50 = vmatpush.msra.mxu0 %v29_v4  ;;  %v41_v13 = vld [vmem:[%s712_s1 + $0xc8] sm:$0xff]  ;;  %v40_v15 = vld [vmem:[%s712_s1 + $0xc0] sm:$0xff] }
   0x7   :  { %73 = vmatpush.msra.mxu1 %v45_v5 }
   0x8   :  { %51 = vmatpush.msra.mxu0 %v28_v6 }
   0x9   :  { %74 = vmatpush.msra.mxu1 %v44_v7 }
   0xa   :  { %52 = vmatpush.msra.mxu0 %v27_v8 }
   0xb   :  { %75 = vmatpush.msra.mxu1 %v43_v9 }
   0xc   :  { %53 = vmatpush.msra.mxu0 %v26_v10 }
   0xd   :  { %76 = vmatpush.msra.mxu1 %v42_v11 }
   0xe   :  { %7 = vsyncpa [#allocation3], 0  ;;  %54 = vmatpush.msra.mxu0 %v25_v12  ;;  %v23_v16 = vld [vmem:[%s712_s1 + $0x38] sm:$0xff]  ;;  %v22_v18 = vld [vmem:[%s712_s1 + $0x30] sm:$0xff]  ;;  %vm100_vm0 = vcmask 130048   ;;  %vm314_vm1 = vcmask 1041408  }
   0xf   :  { %77 = vmatpush.msra.mxu1 %v41_v13  ;;  %v39_v17 = vld [vmem:[%s712_s1 + $0xb8] sm:$0xff]  ;;  %v38_v19 = vld [vmem:[%s712_s1 + $0xb0] sm:$0xff]  ;;  %v21_v20 = vld [vmem:[%s712_s1 + $0x28] sm:$0xff]  ;;  %vm307_vm2 = vcmask 15360   ;;  %vm347_vm3 = vcmask 261120   ;;  %s422_s16 = sshll.u32 %s713_s2, 4  ;;  %s423_s16 = int_to_ptr.hbm [resolvable:$true] %s422_s16 }
  0x10   :  { %55 = vmatpush.msra.mxu0 %v24_v14  ;;  %v37_v21 = vld [vmem:[%s712_s1 + $0xa8] sm:$0xff]  ;;  %v20_v22 = vld [vmem:[%s712_s1 + $0x20] sm:$0xff]  ;;  %v19_v24 = vld [vmem:[%s712_s1 + $0x18] sm:$0xff]  ;;  %s490_s17 = smov 256   ;;  %s491_s18 = smov 16  }
  0x11   :  { %78 = vmatpush.msra.mxu1 %v40_v15  ;;  %v36_v23 = vld [vmem:[%s712_s1 + $0xa0] sm:$0xff]  ;;  %v35_v25 = vld [vmem:[%s712_s1 + $0x98] sm:$0xff]  ;;  %v18_v26 = vld [vmem:[%s712_s1 + $0x10] sm:$0xff] }
  0x12   :  { %56 = vmatpush.msra.mxu0 %v23_v16  ;;  %v34_v27 = vld [vmem:[%s712_s1 + $0x90] sm:$0xff]  ;;  %v17_v28 = vld [vmem:[%s712_s1 + $0x8] sm:$0xff]  ;;  %v16_v30 = vld [vmem:[%s712_s1] sm:$0xff] }
  0x13   :  { %79 = vmatpush.msra.mxu1 %v39_v17  ;;  %v33_v29 = vld [vmem:[%s712_s1 + $0x88] sm:$0xff]  ;;  %v32_v31 = vld [vmem:[%s712_s1 + $0x80] sm:$0xff]  ;;  %v618_v34 = vld [vmem:[%s711_s0 + $0x10] sm:$0xff] }
  0x14   :  { %57 = vmatpush.msra.mxu0 %v22_v18  ;;  %v606_v32 = vld [vmem:[%s711_s0] sm:$0xff]  ;;  %v611_v33 = vld [vmem:[%s711_s0 + $0x8] sm:$0xff]  ;;  %v623_v35 = vld [vmem:[%s711_s0 + $0x18] sm:$0xff] }
  0x15   :  { %80 = vmatpush.msra.mxu1 %v38_v19  ;;  %v97_v36 = vld [vmem:[%s712_s1 + $0x118] sm:$0xff]  ;;  %v146_v37 = vld [vmem:[%s712_s1 + $0x128] sm:$0xff]  ;;  %v96_v38 = vld [vmem:[%s712_s1 + $0x110] sm:$0xff] }
  0x16   :  { %58 = vmatpush.msra.mxu0 %v21_v20  ;;  %117 = vmatpush.msra.mxu3 %v97_v36  ;;  %v145_v39 = vld [vmem:[%s712_s1 + $0x120] sm:$0xff]  ;;  %v95_v40 = vld [vmem:[%s712_s1 + $0x108] sm:$0xff]  ;;  %v172_v49 = vld [vmem:[%s712_s1 + $0x138] sm:$0xff] }
  0x17   :  { %81 = vmatpush.msra.mxu1 %v37_v21  ;;  %164 = vmatpush.msra.mxu2 %v146_v37  ;;  %v94_v41 = vld [vmem:[%s712_s1 + $0x100] sm:$0xff]  ;;  %v198_v42 = vld [vmem:[%s712_s1 + $0x148] sm:$0xff]  ;;  %v171_v51 = vld [vmem:[%s712_s1 + $0x130] sm:$0xff] }
  0x18   :  { %59 = vmatpush.msra.mxu0 %v20_v22  ;;  %118 = vmatpush.msra.mxu3 %v96_v38  ;;  %v197_v43 = vld [vmem:[%s712_s1 + $0x140] sm:$0xff]  ;;  %v250_v50 = vld [vmem:[%s712_s1 + $0x168] sm:$0xff]  ;;  %v224_v56 = vld [vmem:[%s712_s1 + $0x158] sm:$0xff] }
  0x19   :  { %82 = vmatpush.msra.mxu1 %v36_v23  ;;  %165 = vmatpush.msra.mxu2 %v145_v39  ;;  %v249_v52 = vld [vmem:[%s712_s1 + $0x160] sm:$0xff]  ;;  %v223_v57 = vld [vmem:[%s712_s1 + $0x150] sm:$0xff]  ;;  %v276_v60 = vld [vmem:[%s712_s1 + $0x178] sm:$0xff] }
  0x1a   :  { %60 = vmatpush.msra.mxu0 %v19_v24  ;;  %139 = vmatpush.msrb.mxu3 %v95_v40  ;;  %v275_v61 = vld [vmem:[%s712_s1 + $0x170] sm:$0xff]  ;;  %v453_v13 = vld [vmem:[%s712_s1 + $0x180] ss:$0 sm:$0xff]  ;;  %v305_v18 = vld [vmem:[%s712_s1 + $0x1a8] sm:$0xff] }
  0x1b   :  { %83 = vmatpush.msra.mxu1 %v35_v25  ;;  %216 = vmatpush.msrb.mxu2 %v198_v42  ;;  %v306_v19 = vld [vmem:[%s712_s1 + $0x1b0] sm:$0xff]  ;;  %v341_v20 = vld [vmem:[%s712_s1 + $0x188] sm:$0xff]  ;;  %v344_v37 = vld [vmem:[%s712_s1 + $0x1a0] sm:$0xff] }
  0x1c   :  { %61 = vmatpush.msra.mxu0 %v18_v26  ;;  %140 = vmatpush.msrb.mxu3 %v94_v41  ;;  %v342_v24 = vld [vmem:[%s712_s1 + $0x190] sm:$0xff] }
  0x1d   :  { %84 = vmatpush.msra.mxu1 %v34_v27  ;;  %217 = vmatpush.msrb.mxu2 %v197_v43 }
  0x1e   :  { %62 = vmatpush.msra.mxu0 %v17_v28  ;;  %v488_v28 = vmov 0  }
  0x1f   :  { %85 = vmatpush.msra.mxu1 %v33_v29  ;;  %451 = vset.pattern.permute.xlu1 %v488_v28  ;;  %v343_v29 = vld [vmem:[%s712_s1 + $0x198] sm:$0xff]  ;;  %s489_s1 = smov [#allocation2]  }
  0x20   :  { %63 = vmatpush.msra.mxu0 %v16_v30  ;;  %452 = vset.pattern.permute.xlu0 %v488_v28  ;;  %s420_s13 = sshll.u32 %s489_s1, 4  ;;  %s421_s13 = int_to_ptr.vmem [resolvable:$true] %s420_s13 }
  0x21   :  { %86 = vmatpush.msra.mxu1 %v32_v31  ;;  %64 = vmatmul.f32.vlgmr.msra.gmra.mxu0 %v606_v32 }
  0x22   :  { %87 = vmatmul.f32.vlgmr.msra.gmra.mxu1 %v611_v33 }
  0x29   :  { %67 = vmatmul.f32.gmra.mxu0 %v618_v34 }
  0x2a   :  { %90 = vmatmul.f32.gmra.mxu1 %v623_v35 }
  0x9e   :  { %v65_v44 = vpop.f32.mrf.mxu0 }
  0x9f   :  { %v88_v45 = vpop.f32.mrf.mxu1 }
  0xa0   :  { %v89_v46 = vadd.f32 %v88_v45, %v65_v44 }
  0xa2   :  { %v99_v47 = vrot.slane %v89_v46, 2  ;;  %v147_v48 = vrot.slane %v89_v46, 4  ;;  %v173_v59 = vrot.slane %v89_v46, 6 }
  0xa4   :  { %434 = vmatmul.msk.f32.vlgmr.msra.gmra.mxu3 %vm100_vm0, %v99_v47  ;;  %436 = vmatmul.msk.f32.vlgmr.msra.gmra.mxu2 %vm100_vm0, %v147_v48 }
  0xa5   :  { %190 = vmatpush.msra.mxu3 %v172_v49  ;;  %268 = vmatpush.msra.mxu2 %v250_v50 }
  0xa6   :  { %v68_v53 = vpop.f32.mrf.mxu0 }
  0xa7   :  { %v91_v54 = vpop.f32.mrf.mxu1  ;;  %191 = vmatpush.msra.mxu3 %v171_v51  ;;  %269 = vmatpush.msra.mxu2 %v249_v52 }
  0xa8   :  { %v92_v55 = vadd.f32 %v91_v54, %v68_v53 }
  0xaa   :  { %v251_v58 = vrot.slane %v92_v55, 4  ;;  %v225_v62 = vrot.slane %v92_v55, 2  ;;  %v277_v63 = vrot.slane %v92_v55, 6 }
  0xac   :  { %435 = vmatmul.msk.f32.vlgmr.msrb.gmra.mxu3 %vm100_vm0, %v89_v46  ;;  %438 = vmatmul.msk.f32.vlgmr.msrb.gmra.mxu2 %vm100_vm0, %v92_v55 }
  0xad   :  { %242 = vmatpush.msrb.mxu3 %v224_v56 }
  0xaf   :  { %243 = vmatpush.msrb.mxu3 %v223_v57 }
  0xb4   :  { %437 = vmatmul.msk.f32.vlgmr.msra.gmra.mxu3 %vm100_vm0, %v173_v59  ;;  %440 = vmatmul.msk.f32.vlgmr.msra.gmra.mxu2 %vm100_vm0, %v251_v58 }
  0xb5   :  { %294 = vmatpush.msra.mxu3 %v276_v60 }
  0xb7   :  { %295 = vmatpush.msra.mxu3 %v275_v61 }
  0xbc   :  { %439 = vmatmul.msk.f32.vlgmr.msrb.gmra.mxu3 %vm100_vm0, %v225_v62 }
  0xc4   :  { %441 = vmatmul.msk.f32.vlgmr.msra.gmra.mxu3 %vm100_vm0, %v277_v63 }
 0x127   :  { %v120_v0 = vpop.f32.mrf.mxu3  ;;  %v167_v2 = vpop.f32.mrf.mxu2 }
 0x12f   :  { %v142_v1 = vpop.f32.mrf.mxu3  ;;  %v219_v6 = vpop.f32.mrf.mxu2 }
 0x130   :  { %v143_v3 = vadd.f32 %v142_v1, %v120_v0 }
 0x132   :  { %v170_v5 = vadd.f32 %v167_v2, %v143_v3 }
 0x137   :  { %v193_v4 = vpop.f32.mrf.mxu3  ;;  %v271_v11 = vpop.f32.mrf.mxu2 }
 0x138   :  { %v196_v7 = vadd.f32 %v193_v4, %v170_v5 }
 0x13a   :  { %v222_v9 = vadd.f32 %v219_v6, %v196_v7 }
 0x13f   :  { %v245_v8 = vpop.f32.mrf.mxu3 }
 0x140   :  { %v248_v10 = vadd.f32 %v245_v8, %v222_v9 }
 0x142   :  { %v274_v12 = vadd.f32 %v271_v11, %v248_v10 }
 0x147   :  { %v297_v14 = vpop.f32.mrf.mxu3 }
 0x148   :  { %v300_v15 = vadd.f32 %v297_v14, %v274_v12 }
 0x14a   :  { %v303_v16 = vadd.f32 %v453_v13, %v300_v15 }
 0x14c   :  { %v304_v17 = vmax.f32 %v303_v16, 0.0 }
 0x14e   :  { %442 = vmatpush.msk.msrb.mxu2 %vm314_vm1, %v304_v17 }
 0x14f   :  { %443 = vmatmul.msk.f32.vlgmr.msrb.gmra.mxu2 %vm307_vm2, %v305_v18 }
 0x157   :  { %444 = vmatmul.msk.f32.gmra.mxu2 %vm307_vm2, %v306_v19 }
 0x1d2   :  { %v335_v21 = vpop.f32.mrf.mxu2 }
 0x1d3   :  { %v345_v22 = vmul.f32 %v341_v20, %v335_v21 }
 0x1d5   :  { %v348_v23 = vsel %vm347_vm3, %v345_v22, 0.0 }
 0x1d6   :  { %349 = vadd.xlane.f32.xlu0 %v348_v23 }
 0x1da   :  { %v338_v25 = vpop.f32.mrf.mxu2 }
 0x1db   :  { %v346_v26 = vmul.f32 %v342_v24, %v338_v25 }
 0x1dd   :  { %v351_v27 = vsel %vm347_vm3, %v346_v26, 0.0 }
 0x1de   :  { %352 = vadd.xlane.f32.xlu0 %v351_v27 }
 0x249   :  { %v350_v30 = vpop.xlane.xlu0 %349 }
 0x24a   :  { %v354_v31 = vadd.f32 %v350_v30, %v343_v29 }
 0x24c   :  { %v445_v36 = vmul.f32 -1.442695, %v354_v31 }
 0x24e   :  { %454 = vpow2.f32 %v445_v36 }
 0x251   :  { %v353_v38 = vpop.xlane.xlu0 %352 }
 0x252   :  { %v355_v39 = vadd.f32 %v353_v38, %v344_v37 }
 0x254   :  { %v455_v40 = vpop.eup %454  ;;  %v446_v41 = vmul.f32 -1.442695, %v355_v39 }
 0x255   :  { %v362_v42 = vadd.f32 1.0, %v455_v40 }
 0x256   :  { %456 = vpow2.f32 %v446_v41 }
 0x257   :  { %458 = vrcp.f32 %v362_v42  ;;  %v375_v48 = vand.u32 2147483648, %v362_v42  ;;  %v373_v50 = vand.u32 2147483647, %v362_v42  ;;  %vm369_vm5 = vweird.f32 %v362_v42 }
 0x259   :  { %v376_v53 = vor.u32 1.1754944e-38, %v375_v48  ;;  %vm374_vm7 = vcmp.eq.f32.partialorder %v373_v50, 8.507059e+37 }
 0x25c   :  { %v457_v43 = vpop.eup %456 }
 0x25d   :  { %v459_v44 = vpop.eup %458  ;;  %v363_v45 = vadd.f32 1.0, %v457_v43 }
 0x25e   :  { %v365_v46 = vmul.f32 %v459_v44, %v362_v42  ;;  %vm370_vm4 = vweird.f32 %v459_v44 }
 0x25f   :  { %460 = vrcp.f32 %v363_v45  ;;  %vm371_vm6 = vmor %vm369_vm5, %vm370_vm4  ;;  %v390_v58 = vand.u32 2147483648, %v363_v45  ;;  %v388_v60 = vand.u32 2147483647, %v363_v45  ;;  %vm384_vm9 = vweird.f32 %v363_v45 }
 0x260   :  { %v366_v47 = vsub.f32 1.0, %v365_v46 }
 0x261   :  { %v391_v62 = vor.u32 1.1754944e-38, %v390_v58  ;;  %vm389_vm11 = vcmp.eq.f32.partialorder %v388_v60, 8.507059e+37 }
 0x262   :  { %v367_v49 = vmul.f32 %v459_v44, %v366_v47 }
 0x264   :  { %v368_v51 = vadd.f32 %v459_v44, %v367_v49 }
 0x265   :  { %v461_v52 = vpop.eup %460 }
 0x266   :  { %v372_v54 = vsel %vm371_vm6, %v459_v44, %v368_v51  ;;  %v380_v55 = vmul.f32 %v461_v52, %v363_v45  ;;  %vm385_vm8 = vweird.f32 %v461_v52 }
 0x267   :  { %v377_v56 = vsel %vm374_vm7, %v376_v53, %v372_v54  ;;  %vm386_vm10 = vmor %vm384_vm9, %vm385_vm8 }
 0x268   :  { %396 = vperm.xlu1 %451, %v377_v56   ;;  %v381_v57 = vsub.f32 1.0, %v380_v55 }
 0x26a   :  { %v382_v59 = vmul.f32 %v461_v52, %v381_v57 }
 0x26c   :  { %v383_v61 = vadd.f32 %v461_v52, %v382_v59 }
 0x26e   :  { %v387_v63 = vsel %vm386_vm10, %v461_v52, %v383_v61 }
 0x26f   :  { %v392_v0 = vsel %vm389_vm11, %v391_v62, %v387_v63 }
 0x270   :  { %401 = vperm.xlu1 %451, %v392_v0  }
 0x2da   :  { %v397_v1 = vpop.permute.xlu1 %396 }
 0x2db   :  { %v404_v2 = vmul.f32 %v397_v1, %v606_v32  ;;  %v405_v3 = vmul.f32 %v397_v1, %v611_v33 }
 0x2dd   :  { %412 = vst [vmem:[#allocation2 + $0x10] sm:$0xff] %v404_v2 }
 0x2de   :  { %413 = vst [vmem:[#allocation2 + $0x18] sm:$0xff] %v405_v3 }
 0x2e2   :  { %v402_v4 = vpop.permute.xlu1 %401 }
 0x2e3   :  { %v406_v5 = vmul.f32 %v402_v4, %v618_v34  ;;  %v407_v6 = vmul.f32 %v402_v4, %v623_v35 }
 0x2e5   :  { %v408_v7 = vadd.f32 %v406_v5, %v404_v2  ;;  %v409_v8 = vadd.f32 %v407_v6, %v405_v3  ;;  %414 = vst [vmem:[#allocation2 + $0x20] sm:$0xff] %v406_v5 }
 0x2e6   :  { %415 = vst [vmem:[#allocation2 + $0x28] sm:$0xff] %v407_v6 }
 0x2e7   :  { %410 = vst [vmem:[#allocation2] sm:$0xff] %v408_v7 }
 0x2e8   :  { %411 = vst [vmem:[#allocation2 + $0x8] sm:$0xff] %v409_v8 }
 0x2e9   :  { %428 = dma.vmem_to_hbm [thread:$0]  %s421_s13, 768, %s423_s16, [#allocation3], %s490_s17, %s490_s17, %s491_s18  }
 0x2ea   :  { %486 = dma.done.wait [#allocation3], 768  }
 0x2eb   :  { %487 = vsyncadd [#allocation3], 4294966528 }
 0x2ec   :  { %433 = vsyncpa [#allocation3], 1 }

</bundles_post_ra>
